<compile_context>
chip_gen: v6e
topology: v6e:2x2x1
jax: 0.10.0
libtpu: 0.0.40
codegen_flags: <defaults>
</compile_context>

<pallas_src>
import math
import jax
import jax.numpy as jnp
from jax.experimental import pallas as pl
from jax.experimental.pallas import tpu as pltpu


def _cdiv(a, b):
    return (a + b - 1) // b


def _round_up(x, m):
    return ((x + m - 1) // m) * m


def _sublane_unit(dtype):
    """Minimum sublane multiple for a dtype (sub-32-bit packs along sublanes)."""
    size = jnp.dtype(dtype).itemsize
    if size >= 4:
        return 8
    if size == 2:
        return 16
    return 32


def _vmem_budget_bytes():
    """Per-generation VMEM budget: ~3/4 of physical, capped at 96 MiB, >=32 MiB."""
    cap = None
    try:
        info = pltpu.get_tpu_info()
        cap = getattr(info, "vmem_capacity_bytes", None)
    except Exception:
        cap = None
    if not cap:
        cap = 64 * 1024 * 1024  # conservative (v7x-sized) fallback
    return max(32 * 1024 * 1024, min((cap * 3) // 4, 96 * 1024 * 1024))


# --------------------- projection + residual add (in_dim != out_dim) ---------------------

def _proj_add_kernel(a_ref, w_ref, r_ref, o_ref, acc_ref):
    # a_ref: (tm, tk) activations, w_ref: (tk, tn) pre-transposed weight,
    # r_ref / o_ref: (tm, tn) residual / output, acc_ref: (tm, tn) f32 accumulator.
    k = pl.program_id(2)

    @pl.when(k == 0)
    def _():
        acc_ref[...] = jnp.zeros_like(acc_ref)

    acc_ref[...] += jnp.dot(a_ref[...], w_ref[...],
                            preferred_element_type=jnp.float32)

    @pl.when(k == pl.num_programs(2) - 1)
    def _():
        o_ref[...] = (acc_ref[...] + r_ref[...].astype(jnp.float32)).astype(o_ref.dtype)


def _proj_add(a, w_t, r, out_dtype):
    # a: (M, K), w_t: (K, N) [pre-transposed nn.Linear weight], r: (M, N) -> (M, N)
    M, K = a.shape
    N = w_t.shape[1]

    budget = _vmem_budget_bytes()
    big_vmem = budget >= 80 * 1024 * 1024     # v5e / v6e: 128 MiB physical VMEM

    m_unit = max(_sublane_unit(a.dtype), _sublane_unit(r.dtype),
                 _sublane_unit(out_dtype))
    tm_cap = 1024 if big_vmem else 512
    tn_cap = 1024 if big_vmem else 512
    tk_cap = 1024

    tm = min(_round_up(M, m_unit), tm_cap)
    tn = min(_round_up(N, 128), tn_cap)
    tk = min(_round_up(K, 128), tk_cap)

    # Keep >=2 tiles on a parallel axis when possible so both v7x TCs get work.
    if _cdiv(M, tm) == 1 and _cdiv(N, tn) == 1 and M >= 2 * m_unit:
        tm = _round_up(_cdiv(M, 2), m_unit)

    # K must be zero-padded (ragged K blocks would corrupt the accumulator);
    # M / N ragged blocks are masked by Pallas and need no padding / slicing.
    Kp = _round_up(K, tk)
    if Kp != K:
        a = jnp.pad(a, ((0, 0), (0, Kp - K)))
        w_t = jnp.pad(w_t, ((0, Kp - K), (0, 0)))

    grid = (_cdiv(M, tm), _cdiv(N, tn), Kp // tk)

    out_itemsize = jnp.dtype(out_dtype).itemsize
    cost = pl.CostEstimate(
        flops=2 * M * N * Kp,
        transcendentals=0,
        bytes_accessed=(a.size * a.dtype.itemsize
                        + w_t.size * w_t.dtype.itemsize
                        + r.size * r.dtype.itemsize
                        + M * N * out_itemsize),
    )

    return pl.pallas_call(
        _proj_add_kernel,
        out_shape=jax.ShapeDtypeStruct((M, N), out_dtype),
        grid_spec=pltpu.PrefetchScalarGridSpec(
            num_scalar_prefetch=0,
            grid=grid,
            in_specs=[
                pl.BlockSpec((tm, tk), lambda i, j, k: (i, k)),   # activations
                pl.BlockSpec((tk, tn), lambda i, j, k: (k, j)),   # weight (K, N), lane-dense N
                pl.BlockSpec((tm, tn), lambda i, j, k: (i, j)),   # residual (fetched once per (i,j))
            ],
            out_specs=pl.BlockSpec((tm, tn), lambda i, j, k: (i, j)),
            scratch_shapes=[pltpu.VMEM((tm, tn), jnp.float32)],
        ),
        compiler_params=pltpu.CompilerParams(
            dimension_semantics=("parallel", "parallel", "arbitrary"),
            vmem_limit_bytes=budget,
        ),
        cost_estimate=cost,
    )(a, w_t, r)


# --------------------------- pure residual add (in_dim == out_dim) ---------------------------

def _add_kernel(a_ref, r_ref, o_ref):
    o_ref[...] = (a_ref[...] + r_ref[...]).astype(o_ref.dtype)


def _residual_add(a, r, out_dtype):
    # a, r: (M, N) -> (M, N).  Pure HBM-bandwidth op: no wrapper pad/cast/slice.
    M, N = a.shape
    budget = _vmem_budget_bytes()

    m_unit = max(_sublane_unit(a.dtype), _sublane_unit(r.dtype),
                 _sublane_unit(out_dtype))
    tm = min(_round_up(M, m_unit), 512)
    tn = min(_round_up(N, 128), 2048)

    # Split M across both v7x TensorCores when the grid would otherwise be 1x1.
    if _cdiv(M, tm) == 1 and _cdiv(N, tn) == 1 and M >= 2 * m_unit:
        tm = _round_up(_cdiv(M, 2), m_unit)

    grid = (_cdiv(M, tm), _cdiv(N, tn))

    # Reuse the residual buffer for the output when dtypes match exactly.
    aliases = {1: 0} if jnp.dtype(r.dtype) == jnp.dtype(out_dtype) else {}

    return pl.pallas_call(
        _add_kernel,
        out_shape=jax.ShapeDtypeStruct((M, N), out_dtype),
        grid_spec=pl.GridSpec(
            grid=grid,
            in_specs=[
                pl.BlockSpec((tm, tn), lambda i, j: (i, j)),
                pl.BlockSpec((tm, tn), lambda i, j: (i, j)),
            ],
            out_specs=pl.BlockSpec((tm, tn), lambda i, j: (i, j)),
        ),
        compiler_params=pltpu.CompilerParams(
            dimension_semantics=("parallel", "parallel"),
            vmem_limit_bytes=budget,
        ),
        input_output_aliases=aliases,
    )(a, r)


# ------------------------------------- public wrapper -------------------------------------

_TINY_BYTES = 1 << 20   # below this, XLA's fused matmul/add beats pallas_call overhead


def skip_connection(in_x, out_x, weight=None, in_dim=None, out_dim=None,
                    *, force_pallas=False):
    """Forward pass of SkipConnection.

    in_x  : (..., in_dim)
    out_x : (..., out_dim)
    weight: (out_dim, in_dim)  -- PyTorch nn.Linear weight layout (needed iff in_dim != out_dim)
    """
    if in_dim is None:
        in_dim = in_x.shape[-1]
    if out_dim is None:
        out_dim = out_x.shape[-1]

    lead = in_x.shape[:-1]
    M = int(math.prod(lead)) if lead else 1

    a = in_x.reshape(M, in_dim)
    r = out_x.reshape(M, out_dim)

    if in_dim != out_dim:
        out_dtype = jnp.result_type(in_x.dtype, weight.dtype, out_x.dtype)
    else:
        out_dtype = jnp.result_type(in_x.dtype, out_x.dtype)

    tiny = (M * out_dim * jnp.dtype(out_dtype).itemsize) < _TINY_BYTES
    if tiny and not force_pallas:
        # Fast path: at this size pallas_call launch / layout overhead dominates.
        if in_dim != out_dim:
            out = (jnp.einsum("mk,nk->mn", a, weight,
                              preferred_element_type=jnp.float32).astype(out_dtype)
                   + r.astype(out_dtype))
        else:
            out = (a + r).astype(out_dtype)
        return out.reshape(*lead, out_dim)

    if in_dim != out_dim:
        # One-time (out_dim, in_dim) -> (in_dim, out_dim) transpose so the weight tile
        # is lane-dense in N inside the kernel (no per-K-tile XLU transpose).
        out = _proj_add(a, weight.T, r, out_dtype)
    else:
        out = _residual_add(a, r, out_dtype)

    return out.reshape(*lead, out_dim)


if __name__ == "__main__":
    key = jax.random.PRNGKey(0)
    k_w, k_in, k_out, k_in2, k_out2 = jax.random.split(key, 5)

    B, S = 2, 8

    # ---- path 1: in_dim != out_dim (linear projection + residual add) ----
    in_dim, out_dim = 32, 64
    bound = 1.0 / math.sqrt(in_dim)
    weight = jax.random.uniform(k_w, (out_dim, in_dim), jnp.float32, -bound, bound)
    in_x = jax.random.normal(k_in, (B, S, in_dim), jnp.float32)
    out_x = jax.random.normal(k_out, (B, S, out_dim), jnp.float32)

    out = skip_connection(in_x, out_x, weight, in_dim, out_dim, force_pallas=True)
    out = jax.block_until_ready(out)

    ref = jnp.einsum("bsk,nk->bsn", in_x, weight) + out_x
    assert out.shape == (B, S, out_dim)
    assert jnp.allclose(out, ref, atol=1e-5, rtol=1e-5)

    # Tiny-problem fast-path dispatch must agree with the kernel result.
    out_fast = jax.block_until_ready(
        skip_connection(in_x, out_x, weight, in_dim, out_dim))
    assert jnp.allclose(out_fast, ref, atol=1e-5, rtol=1e-5)

    # ---- path 2: in_dim == out_dim (pure residual add) ----
    dim = 64
    in_x2 = jax.random.normal(k_in2, (B, S, dim), jnp.float32)
    out_x2 = jax.random.normal(k_out2, (B, S, dim), jnp.float32)

    out2 = skip_connection(in_x2, out_x2, None, dim, dim, force_pallas=True)
    out2 = jax.block_until_ready(out2)

    ref2 = in_x2 + out_x2
    assert out2.shape == (B, S, dim)
    assert jnp.allclose(out2, ref2, atol=1e-6, rtol=1e-6)

    print("KERNEL_OK")
</pallas_src>

<mosaic_0001>
module attributes {stable_mosaic.version = 11 : i64} {
  func.func @_proj_add_kernel(%arg0: i32, %arg1: i32, %arg2: i32, %arg3: memref<8x128xf32, #tpu.memory_space<vmem>>, %arg4: memref<128x128xf32, #tpu.memory_space<vmem>>, %arg5: memref<8x128xf32, #tpu.memory_space<vmem>>, %arg6: memref<8x128xf32, #tpu.memory_space<vmem>>, %arg7: memref<8x128xf32, #tpu.memory_space<vmem>>) attributes {dimension_semantics = [#tpu.dimension_semantics<parallel>, #tpu.dimension_semantics<parallel>, #tpu.dimension_semantics<arbitrary>], iteration_bounds = array<i64: 2, 1, 1>, scalar_prefetch = 0 : i64, scratch_operands = 1 : i64, tpu.core_type = #tpu.core_type<tc>, window_params = [{transform_indices = @transform_0, window_bounds = array<i64: 8, 128>}, {transform_indices = @transform_1, window_bounds = array<i64: 128, 128>}, {transform_indices = @transform_2, window_bounds = array<i64: 8, 128>}, {transform_indices = @transform_3, window_bounds = array<i64: 8, 128>}]} {
    %c0_i32 = arith.constant 0 : i32
    %0 = arith.cmpi eq, %arg2, %c0_i32 : i32
    %1 = arith.extui %0 : i1 to i32
    %c0_i32_0 = arith.constant 0 : i32
    %2 = arith.cmpi ne, %1, %c0_i32_0 : i32
    scf.if %2 {
      %cst_10 = arith.constant 0.000000e+00 : f32
      %12 = vector.broadcast %cst_10 : f32 to vector<8x128xf32>
      %c0_11 = arith.constant 0 : index
      %c0_12 = arith.constant 0 : index
      %13 = vector.load %arg7[%c0_11, %c0_12] : memref<8x128xf32, #tpu.memory_space<vmem>>, vector<8x128xf32>
      tpu.vector_store %arg7[%c0_11, %c0_12], %12 {strides = array<i32>} : memref<8x128xf32, #tpu.memory_space<vmem>>, vector<8x128xf32>,
    } else {
    }
    %c0 = arith.constant 0 : index
    %c0_1 = arith.constant 0 : index
    %3 = vector.load %arg7[%c0, %c0_1] : memref<8x128xf32, #tpu.memory_space<vmem>>, vector<8x128xf32>
    %c0_2 = arith.constant 0 : index
    %c0_3 = arith.constant 0 : index
    %4 = vector.load %arg3[%c0_2, %c0_3] : memref<8x128xf32, #tpu.memory_space<vmem>>, vector<8x128xf32>
    %c0_4 = arith.constant 0 : index
    %c0_5 = arith.constant 0 : index
    %5 = vector.load %arg4[%c0_4, %c0_5] : memref<128x128xf32, #tpu.memory_space<vmem>>, vector<128x128xf32>
    %cst = arith.constant dense<0.000000e+00> : vector<8x128xf32>
    %6 = tpu.matmul %4, %5, %cst {dimension_numbers = #tpu.dot_dimension_numbers<[1], [0], [0], [1], [0, 0, 1, 1], [], []>} : vector<8x128xf32>, vector<128x128xf32>, vector<8x128xf32> -> vector<8x128xf32>
    %7 = arith.addf %3, %6 : vector<8x128xf32>
    %c0_6 = arith.constant 0 : index
    %c0_7 = arith.constant 0 : index
    %8 = vector.load %arg7[%c0_6, %c0_7] : memref<8x128xf32, #tpu.memory_space<vmem>>, vector<8x128xf32>
    tpu.vector_store %arg7[%c0_6, %c0_7], %7 {strides = array<i32>} : memref<8x128xf32, #tpu.memory_space<vmem>>, vector<8x128xf32>,
    %c0_i32_8 = arith.constant 0 : i32
    %9 = arith.cmpi eq, %arg2, %c0_i32_8 : i32
    %10 = arith.extui %9 : i1 to i32
    %c0_i32_9 = arith.constant 0 : i32
    %11 = arith.cmpi ne, %10, %c0_i32_9 : i32
    scf.if %11 {
      %c0_10 = arith.constant 0 : index
      %c0_11 = arith.constant 0 : index
      %12 = vector.load %arg7[%c0_10, %c0_11] : memref<8x128xf32, #tpu.memory_space<vmem>>, vector<8x128xf32>
      %c0_12 = arith.constant 0 : index
      %c0_13 = arith.constant 0 : index
      %13 = vector.load %arg5[%c0_12, %c0_13] : memref<8x128xf32, #tpu.memory_space<vmem>>, vector<8x128xf32>
      %14 = arith.addf %12, %13 : vector<8x128xf32>
      %c0_14 = arith.constant 0 : index
      %c0_15 = arith.constant 0 : index
      %15 = vector.load %arg6[%c0_14, %c0_15] : memref<8x128xf32, #tpu.memory_space<vmem>>, vector<8x128xf32>
      tpu.vector_store %arg6[%c0_14, %c0_15], %14 {strides = array<i32>} : memref<8x128xf32, #tpu.memory_space<vmem>>, vector<8x128xf32>,
    } else {
    }
    return
  }
  func.func @transform_0(%arg0: i32, %arg1: i32, %arg2: i32) -> (i32, i32) {
    %c0_i32 = arith.constant 0 : i32
    return %arg0, %arg2 : i32, i32
  }
  func.func @transform_1(%arg0: i32, %arg1: i32, %arg2: i32) -> (i32, i32) {
    %c0_i32 = arith.constant 0 : i32
    return %arg2, %arg1 : i32, i32
  }
  func.func @transform_2(%arg0: i32, %arg1: i32, %arg2: i32) -> (i32, i32) {
    %c0_i32 = arith.constant 0 : i32
    return %arg0, %arg1 : i32, i32
  }
  func.func @transform_3(%arg0: i32, %arg1: i32, %arg2: i32) -> (i32, i32) {
    %c0_i32 = arith.constant 0 : i32
    return %arg0, %arg1 : i32, i32
  }
}

</mosaic_0001>

<bundles_post_ra>
// kernel: tpu_custom_call.1
= control target key start
LH: loop header
LB: loop body
LE: loop exit
PB: predicated region body
PF: predicated region fallthrough
CT: control target
= control target key end

     0   :  { %8 = vsyncpa [#allocation4], 0  ;;  %s862_s0 = inlined_call_operand.vmem [shape: f32[16,128], index: 0, kind: input, shape index: {}]   ;;  %s863_s1 = inlined_call_operand.vmem [shape: f32[128,64], index: 1, kind: input, shape index: {}]   ;;  %s864_s2 = inlined_call_operand.vmem [shape: f32[16,64], index: 2, kind: input, shape index: {}]   ;;  %s865_s3 = inlined_call_operand.hbm [shape: f32[16,64], index: 3, kind: output, shape index: {}]  }
   0x1   :  { %10 = vsyncpa [#allocation4 + $0x1], 0  ;;  %s706_s12 = smov 0   ;;  %s708_s13 = smov 0  }
   0x2   :  { %s710_s14 = smov 0   ;;  %s712_s15 = smov 0  }
   0x3   :  { %s714_s16 = smov 0   ;;  %s716_s17 = smov 0  }
   0x4 LB: > { %s483_s18 = sadd.s32 4294967295, %s681_s17   ;;  %s484_s19 = sadd.s32 4294967294, %s681_s17   ;;  %s681_s17 = sphi %s716_s17, %s16_s17   ;;  %s677_s16 = sphi %s714_s16, %s872_s16   ;;  %s673_s15 = sphi %s712_s15, %s871_s15   ;;  %s669_s14 = sphi %s710_s14, %s870_s14   ;;  %s665_s13 = sphi %s708_s13, %s869_s13   ;;  %s661_s12 = sphi %s706_s12, %s868_s12  }
   0x5   : > { %s35_s20 = sadd.s32 1, %s677_s16  ;;  %s128_s21 = sadd.s32 1, %s669_s14 }
   0x6   : > { %p37_p0 = scmp.ge.s32.totalorder %s35_s20, 2  ;;  %p138_p1 = scmp.ne.s32.totalorder %s669_s14, %s665_s13 }
   0x7   : > { %p139_p2 = scmp.eq.s32.totalorder %s483_s18, 1  ;;  %p144_p3 = scmp.ne.s32.totalorder %s665_s13, %s661_s12 }
   0x8   : > { %s874_s20 = smov (%p37_p0, %s35_s20), 0  ;;  %p145_p5 = scmp.eq.s32.totalorder %s484_s19, 1 }
   0x9   : > { %p746_p4 = por %p139_p2, %p138_p1  ;;  %s123_s23 = ssub.s32 %s677_s16, %s874_s20 }
   0xa   : > { %p488_p6 = scmp.ge.s32.totalorder %s681_s17, 1  ;;  %p126_p7 = scmp.eq.s32.totalorder %s123_s23, 0 }
   0xb   : > { %p753_p8 = por %p145_p5, %p144_p3  ;;  %p195_p9 = scmp.lt.s32.totalorder %s681_s17, 3 }
   0xc   : > { %s759_s25 = scalar_select %p126_p7, %s669_s14, %s128_s21  }
   0xd   : > { %p196_p10 = pnand %p488_p6, %p195_p9 }
   0xe   : > { %p236_p11 = scmp.lt.s32.totalorder (!%p196_p10), %s673_s15, 1  ;;  %s233_s29 = sand.u32 (!%p196_p10), 1, %s665_s13  }
   0xf   : > { %199 = sbr.rel (%p196_p10) target bundleno = 261 (0x105), region = 32  ;;  %s489_s30 = sshll.u32 (!%p196_p10), %s233_s29, 3 }
  0x10   : > { %s493_s7 = sshll.u32 (!%p196_p10), %s673_s15, 7  ;;  %s235_s8 = scalar_lea.vmem (!%p196_p10), [#allocation3], %s489_s30 }
  0x11   : > { %s376_s10 = sshll.u32 (!%p196_p10), %s235_s8, 4  ;;  %s822_s19 = scalar_lea.hbm (!%p196_p10), %s865_s3, %s493_s7  ;;  %s377_s10 = int_to_ptr.vmem [resolvable:$true] %s376_s10 }
  0x12   : > { %s362_s21 = scalar_lea.sflag (!%p196_p10), [#allocation4], %s233_s29  ;;  %s605_s23 = scalar_lea.vmem (!%p196_p10), %s377_s10, 128 }
  0x13   : > { %p606_p12 = scmp.ne.s32.totalorder (!%p196_p10), %s377_s10, %s605_s23 }
  0x14   : > { %v281_v0 = vld [vmem:[%s863_s1 + $0x78] sm:$0xff]  ;;  %v683_v1 = vmov 0.0   ;;  %v280_v2 = vld [vmem:[%s863_s1 + $0x70] sm:$0xff]  ;;  %vm684_vm0 = vmmov 0   ;;  %v279_v3 = vld [vmem:[%s863_s1 + $0x68] sm:$0xff]  ;;  %s237_s4 = scalar_select %p236_p11, %s673_s15, 1 }
  0x15   : > { %513 = vmatprep.subr.mxu0 %v683_v1  ;;  %545 = vmatprep.mubr.msk.f32.mxu0 %vm684_vm0, %v683_v1  ;;  %v278_v4 = vld [vmem:[%s863_s1 + $0x60] sm:$0xff]  ;;  %v277_v5 = vld [vmem:[%s863_s1 + $0x58] sm:$0xff]  ;;  %v276_v6 = vld [vmem:[%s863_s1 + $0x50] sm:$0xff]  ;;  %p607_p13 = pnand %p606_p12, %p746_p4 }
  0x16   : > { %514 = vmatpush3.msra.mxu0 %v281_v0  ;;  %v275_v7 = vld [vmem:[%s863_s1 + $0x48] sm:$0xff]  ;;  %v274_v8 = vld [vmem:[%s863_s1 + $0x40] sm:$0xff]  ;;  %v273_v9 = vld [vmem:[%s863_s1 + $0x38] sm:$0xff]  ;;  %s490_s9 = sshll.u32 %s237_s4, 3 }
  0x17   : > { %515 = vmatprep.subr.mxu0 %v683_v1  ;;  %v272_v10 = vld [vmem:[%s863_s1 + $0x30] sm:$0xff]  ;;  %v271_v11 = vld [vmem:[%s863_s1 + $0x28] sm:$0xff]  ;;  %v270_v12 = vld [vmem:[%s863_s1 + $0x20] sm:$0xff]  ;;  %s242_s26 = scalar_lea.vmem %s862_s0, %s490_s9  ;;  %s258_s6 = scalar_lea.vmem %s864_s2, %s490_s9 }
  0x18   : > { %516 = vmatpush3.msra.mxu0 %v280_v2  ;;  %v269_v13 = vld [vmem:[%s863_s1 + $0x18] sm:$0xff]  ;;  %v268_v14 = vld [vmem:[%s863_s1 + $0x10] sm:$0xff]  ;;  %v267_v15 = vld [vmem:[%s863_s1 + $0x8] sm:$0xff]  ;;  %p608_p0 = pneg %p607_p13  ;;  %s685_s9 = smov [#allocation3]  }
  0x19   : > { %517 = vmatprep.subr.mxu0 %v683_v1  ;;  %v266_v16 = vld [vmem:[%s863_s1] sm:$0xff]  ;;  %s609_s15 = sshll.u32 %s685_s9, 4  ;;  %s610_s15 = int_to_ptr.vmem [resolvable:$false] %s609_s15 }
  0x1a   : > { %518 = vmatpush3.msra.mxu0 %v279_v3  ;;  %v265_v17 = vld [vmem:[%s242_s26] sm:$0xff]  ;;  %s611_s26 = scalar_lea.vmem %s610_s15, 256  ;;  %p612_p1 = scmp.lt.s32.totalorder %s377_s10, %s610_s15 }
  0x1b   : > { %519 = vmatprep.subr.mxu0 %v683_v1  ;;  %v358_v18 = vld [vmem:[%s258_s6] sm:$0xff]  ;;  %p613_p2 = scmp.lt.s32.totalorder %s611_s26, %s605_s23 }
  0x1c   : > { %520 = vmatpush3.msra.mxu0 %v278_v4 }
  0x1d   : > { %521 = vmatprep.subr.mxu0 %v683_v1  ;;  %p614_p3 = por %p613_p2, %p612_p1 }
  0x1e   : > { %522 = vmatpush3.msra.mxu0 %v277_v5 }
  0x1f   : > { %523 = vmatprep.subr.mxu0 %v683_v1  ;;  %p615_p5 = pnand %p614_p3, %p608_p0 }
  0x20   : > { %524 = vmatpush3.msra.mxu0 %v276_v6 }
  0x21   : > { %525 = vmatprep.subr.mxu0 %v683_v1 }
  0x22   : > { %526 = vmatpush3.msra.mxu0 %v275_v7 }
  0x23   : > { %527 = vmatprep.subr.mxu0 %v683_v1 }
  0x24   : > { %528 = vmatpush3.msra.mxu0 %v274_v8 }
  0x25   : > { %529 = vmatprep.subr.mxu0 %v683_v1 }
  0x26   : > { %530 = vmatpush3.msra.mxu0 %v273_v9 }
  0x27   : > { %531 = vmatprep.subr.mxu0 %v683_v1 }
  0x28   : > { %532 = vmatpush3.msra.mxu0 %v272_v10 }
  0x29   : > { %533 = vmatprep.subr.mxu0 %v683_v1 }
  0x2a   : > { %534 = vmatpush3.msra.mxu0 %v271_v11 }
  0x2b   : > { %535 = vmatprep.subr.mxu0 %v683_v1 }
  0x2c   : > { %536 = vmatpush3.msra.mxu0 %v270_v12 }
  0x2d   : > { %537 = vmatprep.subr.mxu0 %v683_v1 }
  0x2e   : > { %538 = vmatpush3.msra.mxu0 %v269_v13 }
  0x2f   : > { %539 = vmatprep.subr.mxu0 %v683_v1 }
  0x30   : > { %540 = vmatpush3.msra.mxu0 %v268_v14 }
  0x31   : > { %541 = vmatprep.subr.mxu0 %v683_v1 }
  0x32   : > { %542 = vmatpush3.msra.mxu0 %v267_v15 }
  0x33   : > { %543 = vmatprep.subr.mxu0 %v683_v1 }
  0x34   : > { %544 = vmatpush3.msra.mxu0 %v266_v16 }
  0x35   : > { %546 = vmatmul.mubr.f32.vlgmr.msra.gmra.mxu0 %v265_v17 }
  0xf5   : > { %v348_v19 = vpop.f32.mrf.mxu0 }
  0xf6   : > { %v359_v20 = vadd.f32 %v358_v18, %v348_v19 }
  0xf7   : > { %v547_v21 = vpop.f32.mrf.mxu0 }
  0xf8   : > { %360 = vst [vmem:[%s235_s8] sm:$0xff] %v359_v20 }
  0xf9   : > { %618 = shalt.err (!%p615_p5)
}
  0xfa   : > { %s619_s27 = scalar_lea.hbm %s822_s19, 128  ;;  %s623_s30 = scalar_lea.hbm %s865_s3, 256 }
  0xfb   : > { %p620_p6 = scmp.ne.s32.totalorder %s822_s19, %s619_s27  ;;  %p624_p10 = scmp.lt.s32.totalorder %s822_s19, %s865_s3 }
  0xfc   : > { %p625_p11 = scmp.lt.s32.totalorder %s623_s30, %s619_s27 }
  0xfd   : > { %p621_p7 = pnand %p620_p6, %p746_p4 }
  0xfe   : > { %p626_p12 = por %p625_p11, %p624_p10 }
  0xff   : > { %p622_p9 = pneg %p621_p7 }
 0x101   : > { %p627_p13 = pnand %p626_p12, %p622_p9 }
 0x103   : > { %630 = shalt.err (!%p627_p13)
}
 0x104   : > { %548 = dma.vmem_to_hbm [thread:$0]  (%p746_p4), %s377_s10, 128, %s822_s19, %s362_s21  }
 0x105 PF: > { %p554_p0 = scmp.ge.s32.totalorder %s681_s17, 2  ;;  %s388_s6 = sand.u32 1, %s661_s12  }
 0x106   : > { %s389_s7 = scalar_lea.sflag [#allocation4], %s388_s6 }
 0x107   : > { %p551_p1 = pnand %p554_p0, %p753_p8 }
 0x109   : > { %p552_p2 = pneg %p551_p1 }
 0x10b   : > { %656 = dma.done.wait (%p552_p2), %s389_s7, 128  }
 0x10c   : > { %658 = vsyncadd (%p552_p2), %s389_s7, 4294967168  ;;  %s16_s17 = sadd.s32 1, %s681_s17   ;;  %s868_s12 = smov %s665_s13 }
 0x10d   : > { %p13_p3 = scmp.ge.s32.totalorder %s16_s17, 4   ;;  %s869_s13 = smov %s669_s14 }
 0x10e   : > { %s870_s14 = smov %s759_s25  ;;  %s871_s15 = smov %s677_s16 }
 0x10f   : > { %s872_s16 = smov %s874_s20  ;;  %15 = sbr.rel (!%p13_p3) target bundleno = 4 (0x4), region = 81 }
 0x114   :  { %394 = vsyncpa [#allocation4], 1 }
 0x115   :  { %396 = vsyncpa [#allocation4 + $0x1], 1 }

</bundles_post_ra>
